<compile_context>
chip_gen: v6e
topology: v6e:2x2x1
jax: 0.10.0
libtpu: 0.0.40
codegen_flags: <defaults>
</compile_context>

<pallas_src>
import functools
import math

import jax
import jax.numpy as jnp
from jax.experimental import pallas as pl
from jax.experimental.pallas import tpu as pltpu


# ----------------------------------------------------------------------------
# Pad-amount computation: verbatim translation of SamePad2d.forward(),
# including its width/height naming quirk ("width" = size()[2], "height" =
# size()[3]; F.pad(x,(l,r,t,b)) pads dim 3 by (l,r) and dim 2 by (t,b)).
# ----------------------------------------------------------------------------
def same_pad_amounts(shape_nchw, kernel_size, stride):
    in_width = shape_nchw[2]
    in_height = shape_nchw[3]
    out_width = math.ceil(float(in_width) / float(stride[0]))
    out_height = math.ceil(float(in_height) / float(stride[1]))
    pad_along_width = (out_width - 1) * stride[0] + kernel_size[0] - in_width
    pad_along_height = (out_height - 1) * stride[1] + kernel_size[1] - in_height
    pad_left = math.floor(pad_along_width / 2)
    pad_top = math.floor(pad_along_height / 2)
    pad_right = pad_along_width - pad_left
    pad_bottom = pad_along_height - pad_top
    # dim 2 <- (pad_top, pad_bottom); dim 3 (last) <- (pad_left, pad_right)
    return pad_left, pad_right, pad_top, pad_bottom


# ----------------------------------------------------------------------------
# Kernel: one (c_tile, H, W) block -> (c_tile, Hp, Wp) padded block.
# Build the padded tile in registers, then a single full-block store.
# ----------------------------------------------------------------------------
def _same_pad_kernel(x_ref, o_ref, *, pads):
    pad_left, pad_right, pad_top, pad_bottom = pads
    ct, H, W = x_ref.shape
    _, Hp, Wp = o_ref.shape
    dt = o_ref.dtype

    x = x_ref[...]

    # Pad W (lane axis) by zero-concatenation (shift/select on VPU/XLU slots).
    if pad_left or pad_right:
        parts = []
        if pad_left:
            parts.append(jnp.zeros((ct, H, pad_left), dt))
        parts.append(x)
        if pad_right:
            parts.append(jnp.zeros((ct, H, pad_right), dt))
        x = jnp.concatenate(parts, axis=2)

    # Pad H (sublane axis).
    if pad_top or pad_bottom:
        parts = []
        if pad_top:
            parts.append(jnp.zeros((ct, pad_top, Wp), dt))
        parts.append(x)
        if pad_bottom:
            parts.append(jnp.zeros((ct, pad_bottom, Wp), dt))
        x = jnp.concatenate(parts, axis=1)

    # One full-block, unmasked, lane-dense store.
    o_ref[...] = x


# ----------------------------------------------------------------------------
# Wrapper: merge (N, C) into one grid axis, ragged-tile it with pl.cdiv,
# size the tile from (8,128)/dtype-padded VMEM bytes.
# ----------------------------------------------------------------------------
def same_pad_2d(x, kernel_size, stride):
    if isinstance(kernel_size, int):
        kernel_size = (kernel_size, kernel_size)
    if isinstance(stride, int):
        stride = (stride, stride)

    N, C, H, W = x.shape
    pad_left, pad_right, pad_top, pad_bottom = same_pad_amounts(
        x.shape, kernel_size, stride)
    assert min(pad_left, pad_right, pad_top, pad_bottom) >= 0, \
        "negative SAME pad (cropping) not supported"

    Hp = H + pad_top + pad_bottom
    Wp = W + pad_left + pad_right
    if (pad_left, pad_right, pad_top, pad_bottom) == (0, 0, 0, 0):
        # NOTE: returns the input array itself (no copy) — fine under JAX's
        # functional semantics.
        return x

    NC = N * C
    x_flat = x.reshape(NC, H, W)  # free for contiguous NCHW

    # --- VMEM-aware tile sizing ----------------------------------------------
    itemsize = jnp.dtype(x.dtype).itemsize
    sub = max(8, 32 // itemsize)           # sublane pack: f32->8, bf16->16, i8->32

    def _rup(a, m):
        return ((a + m - 1) // m) * m

    per_slice_in = _rup(H, sub) * _rup(W, 128) * itemsize     # padded VMEM bytes
    per_slice_out = _rup(Hp, sub) * _rup(Wp, 128) * itemsize

    pair_budget = 10 * 1024 * 1024         # in+out per block; x2 buffering < 32 MiB
    c_tile = max(1, pair_budget // (per_slice_in + per_slice_out))
    c_tile = min(c_tile, NC)
    if NC >= 2:
        # Guarantee >=2 grid blocks so v7x's second TensorCore is not idle.
        c_tile = min(c_tile, pl.cdiv(NC, 2))
    grid = (pl.cdiv(NC, c_tile),)
    pair_bytes = c_tile * (per_slice_in + per_slice_out)

    kernel = functools.partial(
        _same_pad_kernel, pads=(pad_left, pad_right, pad_top, pad_bottom))

    out_flat = pl.pallas_call(
        kernel,
        out_shape=jax.ShapeDtypeStruct((NC, Hp, Wp), x.dtype),
        grid_spec=pltpu.PrefetchScalarGridSpec(
            num_scalar_prefetch=0,
            grid=grid,
            in_specs=[pl.BlockSpec((c_tile, H, W), lambda i: (i, 0, 0))],
            out_specs=pl.BlockSpec((c_tile, Hp, Wp), lambda i: (i, 0, 0)),
        ),
        compiler_params=pltpu.CompilerParams(
            dimension_semantics=("parallel",),
            vmem_limit_bytes=max(16 << 20, 2 * pair_bytes + (2 << 20)),
        ),
        cost_estimate=pl.CostEstimate(
            flops=0,
            transcendentals=0,
            bytes_accessed=NC * (H * W + Hp * Wp) * itemsize,
        ),
    )(x_flat)

    return out_flat.reshape(N, C, Hp, Wp)


# ----------------------------------------------------------------------------
# Pure-JAX reference for correctness checking.
# ----------------------------------------------------------------------------
def same_pad_2d_ref(x, kernel_size, stride):
    if isinstance(kernel_size, int):
        kernel_size = (kernel_size, kernel_size)
    if isinstance(stride, int):
        stride = (stride, stride)
    pad_left, pad_right, pad_top, pad_bottom = same_pad_amounts(
        x.shape, kernel_size, stride)
    return jnp.pad(x, ((0, 0), (0, 0),
                       (pad_top, pad_bottom), (pad_left, pad_right)))


if __name__ == "__main__":
    key = jax.random.PRNGKey(0)
    k1, k2 = jax.random.split(key)

    N, C, H, W = 2, 4, 16, 16
    x = jax.random.normal(k1, (N, C, H, W), jnp.float32)

    # Case 1: kernel=3, stride=1 -> symmetric pad of 1 on each side.
    out1 = jax.block_until_ready(same_pad_2d(x, 3, 1))
    ref1 = same_pad_2d_ref(x, 3, 1)
    assert out1.shape == ref1.shape == (N, C, H + 2, W + 2)
    assert jnp.array_equal(out1, ref1), "mismatch vs reference (k=3, s=1)"

    # Case 2: kernel=3, stride=2 -> asymmetric pad (0 top/left, 1 bottom/right).
    out2 = jax.block_until_ready(same_pad_2d(x, 3, 2))
    ref2 = same_pad_2d_ref(x, 3, 2)
    assert out2.shape == ref2.shape
    assert jnp.array_equal(out2, ref2), "mismatch vs reference (k=3, s=2)"

    # Case 3: odd N*C and non-multiple spatial dims -> exercises the ragged
    # (pl.cdiv) leading-axis tiling path.
    x3 = jax.random.normal(k2, (1, 3, 9, 7), jnp.float32)
    out3 = jax.block_until_ready(same_pad_2d(x3, 3, 2))
    ref3 = same_pad_2d_ref(x3, 3, 2)
    assert out3.shape == ref3.shape
    assert jnp.array_equal(out3, ref3), "mismatch vs reference (ragged case)"

    print("KERNEL_OK")
</pallas_src>

<mosaic_0001>
module attributes {stable_mosaic.version = 11 : i64} {
  func.func @_same_pad_kernel(%arg0: i32, %arg1: memref<4x16x16xf32, #tpu.memory_space<vmem>>, %arg2: memref<4x18x18xf32, #tpu.memory_space<vmem>>) attributes {dimension_semantics = [#tpu.dimension_semantics<parallel>], iteration_bounds = array<i64: 2>, scalar_prefetch = 0 : i64, scratch_operands = 0 : i64, tpu.core_type = #tpu.core_type<tc>, window_params = [{transform_indices = @transform_0, window_bounds = array<i64: 4, 16, 16>}, {transform_indices = @transform_1, window_bounds = array<i64: 4, 18, 18>}]} {
    %c0 = arith.constant 0 : index
    %c0_0 = arith.constant 0 : index
    %c0_1 = arith.constant 0 : index
    %0 = vector.load %arg1[%c0, %c0_0, %c0_1] : memref<4x16x16xf32, #tpu.memory_space<vmem>>, vector<4x16x16xf32>
    %cst = arith.constant 0.000000e+00 : f32
    %1 = vector.broadcast %cst : f32 to vector<4x16x1xf32>
    %cst_2 = arith.constant 0.000000e+00 : f32
    %2 = vector.broadcast %cst_2 : f32 to vector<4x16x1xf32>
    %3 = tpu.concatenate %1, %0, %2 in 2 : vector<4x16x1xf32>, vector<4x16x16xf32>, vector<4x16x1xf32> -> vector<4x16x18xf32>
    %cst_3 = arith.constant 0.000000e+00 : f32
    %4 = vector.broadcast %cst_3 : f32 to vector<4x1x18xf32>
    %cst_4 = arith.constant 0.000000e+00 : f32
    %5 = vector.broadcast %cst_4 : f32 to vector<4x1x18xf32>
    %6 = tpu.concatenate %4, %3, %5 in 1 : vector<4x1x18xf32>, vector<4x16x18xf32>, vector<4x1x18xf32> -> vector<4x18x18xf32>
    %c0_5 = arith.constant 0 : index
    %c0_6 = arith.constant 0 : index
    %c0_7 = arith.constant 0 : index
    %7 = vector.load %arg2[%c0_5, %c0_6, %c0_7] : memref<4x18x18xf32, #tpu.memory_space<vmem>>, vector<4x18x18xf32>
    tpu.vector_store %arg2[%c0_5, %c0_6, %c0_7], %6 {strides = array<i32>} : memref<4x18x18xf32, #tpu.memory_space<vmem>>, vector<4x18x18xf32>,
    return
  }
  func.func @transform_0(%arg0: i32) -> (i32, i32, i32) {
    %c0_i32 = arith.constant 0 : i32
    %c0_i32_0 = arith.constant 0 : i32
    %c0_i32_1 = arith.constant 0 : i32
    return %arg0, %c0_i32, %c0_i32_0 : i32, i32, i32
  }
  func.func @transform_1(%arg0: i32) -> (i32, i32, i32) {
    %c0_i32 = arith.constant 0 : i32
    %c0_i32_0 = arith.constant 0 : i32
    %c0_i32_1 = arith.constant 0 : i32
    return %arg0, %c0_i32, %c0_i32_0 : i32, i32, i32
  }
}

</mosaic_0001>

<bundles_post_ra>
// kernel: tpu_custom_call.1
= control target key start
LH: loop header
LB: loop body
LE: loop exit
PB: predicated region body
PF: predicated region fallthrough
CT: control target
= control target key end

     0   :  { %6 = vsyncpa [#allocation3], 0  ;;  %s615_s0 = inlined_call_operand.hbm [shape: f32[8,16,16], index: 0, kind: input, shape index: {}]   ;;  %s616_s1 = inlined_call_operand.vmem [shape: f32[8,18,18], index: 1, kind: output, shape index: {}]  }
   0x1   :  { %8 = vsyncpa [#allocation3 + $0x1], 0  ;;  %s461_s6 = smov 0   ;;  %s463_s7 = smov 0  }
   0x2   :  { %s465_s8 = smov 0   ;;  %s467_s9 = smov 0  }
   0x3 LB: > { %s324_s10 = sadd.s32 4294967295, %s445_s9   ;;  %s481_s11 = sadd.s32 1, %s445_s9   ;;  %s445_s9 = sphi %s467_s9, %s625_s9   ;;  %s441_s8 = sphi %s465_s8, %s624_s8   ;;  %s437_s7 = sphi %s463_s7, %s623_s7   ;;  %s433_s6 = sphi %s461_s6, %s622_s6  }
   0x4   : > { %s18_s12 = ssub.s32 %s445_s9, %s481_s11  ;;  %s21_s13 = sadd.s32 1, %s441_s8 }
   0x5   : > { %p19_p0 = scmp.eq.s32.totalorder %s18_s12, 0  ;;  %p28_p1 = scmp.ne.s32.totalorder %s441_s8, %s437_s7 }
   0x6   : > { %p29_p2 = scmp.eq.s32.totalorder %s445_s9, 0  ;;  %p34_p3 = scmp.ne.s32.totalorder %s437_s7, %s433_s6 }
   0x7   : > { %s491_s14 = scalar_select %p19_p0, %s441_s8, %s21_s13  }
   0x8   : > { %p30_p4 = por %p29_p2, %p28_p1  ;;  %p35_p5 = scmp.eq.s32.totalorder %s324_s10, 0 }
   0x9   : > { %p347_p6 = scmp.lt.s32.totalorder %s445_s9, 2  ;;  %s84_s16 = sand.u32 1, %s441_s8  }
   0xa   : > { %p496_p7 = por %p35_p5, %p34_p3  ;;  %s328_s17 = sshll.u32 %s84_s16, 6 }
   0xb   : > { %s339_s18 = sshll.u32 %s445_s9, 10  ;;  %s88_s22 = scalar_lea.vmem [#allocation2], %s328_s17 }
   0xc   : > { %s618_s15 = scalar_select %p496_p7, 1, 0 }
   0xd   : > { %s505_s21 = scalar_lea.hbm %s615_s0, %s339_s18  ;;  %s96_s23 = sshll.u32 %s88_s22, 4  ;;  %s507_s23 = int_to_ptr.vmem [resolvable:$true] %s96_s23 }
   0xe   : > { %p509_p8 = pnand %p347_p6, %p30_p4  ;;  %s514_s25 = scalar_lea.sflag [#allocation3], %s84_s16 }
   0xf   : > { %s383_s26 = scalar_lea.hbm %s505_s21, 1024  ;;  %s388_s29 = scalar_lea.hbm %s615_s0, 2048 }
  0x10   : > { %p384_p10 = scmp.ne.s32.totalorder %s505_s21, %s383_s26  ;;  %p385_p11 = pneg %p509_p8 }
  0x11   : > { %p389_p0 = scmp.lt.s32.totalorder %s505_s21, %s615_s0  ;;  %p390_p1 = scmp.lt.s32.totalorder %s388_s29, %s383_s26 }
  0x12   : > { %p386_p12 = pnand %p385_p11, %p384_p10 }
  0x13   : > { %p391_p2 = por %p390_p1, %p389_p0 }
  0x14   : > { %p387_p13 = pneg %p386_p12 }
  0x16   : > { %p392_p3 = pnand %p391_p2, %p387_p13 }
  0x18   : > { %395 = shalt.err (!%p392_p3)
}
  0x19   : > { %s396_s3 = scalar_lea.vmem %s507_s23, 1024  ;;  %s447_s4 = smov [#allocation2]  }
  0x1a   : > { %p397_p4 = scmp.ne.s32.totalorder %s507_s23, %s396_s3  ;;  %s401_s5 = sshll.u32 %s447_s4, 4  ;;  %s402_s5 = int_to_ptr.vmem [resolvable:$false] %s401_s5 }
  0x1b   : > { %s403_s6 = scalar_lea.vmem %s402_s5, 2048  ;;  %p404_p10 = scmp.lt.s32.totalorder %s507_s23, %s402_s5 }
  0x1c   : > { %p399_p5 = pnand %p397_p4, %p385_p11  ;;  %p405_p12 = scmp.lt.s32.totalorder %s403_s6, %s396_s3 }
  0x1e   : > { %p400_p6 = pneg %p399_p5  ;;  %p406_p9 = por %p405_p12, %p404_p10 }
  0x20   : > { %p407_p7 = pnand %p406_p9, %p400_p6 }
  0x22   : > { %410 = shalt.err (!%p407_p7)
}
  0x23   : > { %s448_s12 = smov 128   ;;  %s449_s13 = smov 8  }
  0x24   : > { %346 = dma.hbm_to_vmem [thread:$0]  (!%p509_p8), %s505_s21, 1024, %s507_s23, %s514_s25, %s448_s12, %s448_s12, %s449_s13  }
  0x25   : > { %p104_p11 = scmp.lt.s32.totalorder %s445_s9, 3  ;;  %p620_p13 = scmp.ge.s32.totalorder %s445_s9, 1 }
  0x27   : > { %p105_p0 = pnand %p620_p13, %p104_p11 }
  0x28   : > { %s110_s16 = sand.u32 (!%p105_p0), 1, %s437_s7   ;;  %p621_p7 = scmp.ne.s32.totalorder (!%p105_p0), %s618_s15, 0 }
  0x29   : > { %108 = sbr.rel (%p105_p0) target bundleno = 182 (0xb6), region = 24  ;;  %s333_s17 = sshll.u32 (!%p105_p0), %s110_s16, 6 }
  0x2a   : > { %s111_s18 = scalar_lea.sflag (!%p105_p0), [#allocation3], %s110_s16  ;;  %s114_s19 = scalar_lea.vmem (!%p105_p0), [#allocation2], %s333_s17 }
  0x2e   : > { %428 = dma.done.wait (%p621_p7), %s111_s18, 1024  }
  0x2f   : > { %430 = vsyncadd (%p621_p7), %s111_s18, 4294966272  ;;  %v144_v0 = vld [vmem:[%s114_s19 + $0x10] sm:$0xff]  ;;  %v142_v1 = vld [vmem:[%s114_s19] sm:$0xff]  ;;  %s450_s20 = smov 1   ;;  %s334_s15 = sshll.u32 %s324_s10, 2  ;;  %vm182_vm0 = vcmask 7168  }
  0x30   : > { %162 = vrot.lane.b32.xlu1 %v144_v0, %s450_s20  ;;  %158 = vrot.lane.b32.xlu0 %v142_v1, %s450_s20  ;;  %v145_v2 = vld [vmem:[%s114_s19 + $0x18] sm:$0xff]  ;;  %v143_v3 = vld [vmem:[%s114_s19 + $0x8] sm:$0xff]  ;;  %p136_p8 = scmp.lt.s32.totalorder %s334_s15, 7  ;;  %vm191_vm1 = vcmask 138240   ;;  %vm208_vm2 = vcmask 1040384   ;;  %vm241_vm3 = vcmask 146432  }
  0x31   : > { %v147_v4 = vld [vmem:[%s114_s19 + $0x28] sm:$0xff]  ;;  %v146_v5 = vld [vmem:[%s114_s19 + $0x20] sm:$0xff]  ;;  %v149_v6 = vld [vmem:[%s114_s19 + $0x38] sm:$0xff]  ;;  %vm244_vm4 = vcmask 140288  }
  0x32   : > { %v148_v7 = vld [vmem:[%s114_s19 + $0x30] sm:$0xff]  ;;  %s627_s15 = smov (!%p136_p8, %s334_s15), 7 }
  0x33   : > { %s340_s21 = smul.u32 24, %s627_s15 }
  0x34   : > { %164 = vrot.lane.b32.xlu1 %v145_v2, %s450_s20  ;;  %160 = vrot.lane.b32.xlu0 %v143_v3, %s450_s20 }
  0x35   : > { %s552_s10 = scalar_lea.vmem %s616_s1, %s340_s21 }
  0x38   : > { %168 = vrot.lane.b32.xlu1 %v147_v4, %s450_s20  ;;  %166 = vrot.lane.b32.xlu0 %v146_v5, %s450_s20 }
  0x3c   : > { %172 = vrot.lane.b32.xlu1 %v149_v6, %s450_s20  ;;  %170 = vrot.lane.b32.xlu0 %v148_v7, %s450_s20 }
  0xa2   : > { %v163_v8 = vpop.permute.xlu1 %162  ;;  %v159_v9 = vpop.permute.xlu0 %158 }
  0xa3   : > { %v185_v10 = vsel %vm182_vm0, 0.0, %v163_v8  ;;  %v183_v11 = vsel %vm182_vm0, 0.0, %v159_v9 }
  0xa4   : > { %v194_v12 = vsel %vm191_vm1, %v185_v10, 0.0  ;;  %v192_v13 = vsel %vm191_vm1, %v183_v11, 0.0 }
  0xa5   : > { %v212_v14 = vrot.slane %v194_v12, 7  ;;  %v209_v15 = vrot.slane %v192_v13, 7 }
  0xa6   : > { %v165_v16 = vpop.permute.xlu1 %164  ;;  %v161_v17 = vpop.permute.xlu0 %160 }
  0xa7   : > { %v234_v18 = vsel %vm208_vm2, 0.0, %v212_v14  ;;  %v233_v19 = vsel %vm208_vm2, 0.0, %v209_v15  ;;  %v186_v20 = vsel %vm182_vm0, 0.0, %v165_v16  ;;  %v184_v21 = vsel %vm182_vm0, 0.0, %v161_v17 }
  0xa8   : > { %242 = vst.msk [vmem:[%s552_s10] sm:$0xff] %vm241_vm3, %v233_v19  ;;  %v195_v22 = vsel %vm191_vm1, %v186_v20, 0.0  ;;  %v193_v23 = vsel %vm191_vm1, %v184_v21, 0.0  ;;  %246 = vst.msk [vmem:[%s552_s10 + $0x18] sm:$0xff] %vm241_vm3, %v234_v18 }
  0xa9   : > { %v213_v24 = vrot.slane %v195_v22, 7  ;;  %v210_v25 = vrot.slane %v193_v23, 7 }
  0xaa   : > { %v169_v26 = vpop.permute.xlu1 %168  ;;  %v167_v27 = vpop.permute.xlu0 %166 }
  0xab   : > { %v214_v28 = vsel %vm208_vm2, %v212_v14, %v213_v24  ;;  %v238_v29 = vsel %vm208_vm2, %v213_v24, 0.0  ;;  %v211_v30 = vsel %vm208_vm2, %v209_v15, %v210_v25  ;;  %v237_v31 = vsel %vm208_vm2, %v210_v25, 0.0 }
  0xac   : > { %243 = vst.msk [vmem:[%s552_s10 + $0x8] sm:$0xff] %vm241_vm3, %v211_v30  ;;  %v188_v32 = vsel %vm182_vm0, 0.0, %v169_v26  ;;  %v187_v33 = vsel %vm182_vm0, 0.0, %v167_v27  ;;  %247 = vst.msk [vmem:[%s552_s10 + $0x20] sm:$0xff] %vm241_vm3, %v214_v28 }
  0xad   : > { %245 = vst.msk [vmem:[%s552_s10 + $0x10] sm:$0x3] %vm244_vm4, %v237_v31  ;;  %248 = vst.msk [vmem:[%s552_s10 + $0x28] sm:$0x3] %vm244_vm4, %v238_v29  ;;  %v197_v34 = vsel %vm191_vm1, %v188_v32, 0.0  ;;  %v196_v35 = vsel %vm191_vm1, %v187_v33, 0.0 }
  0xae   : > { %v216_v36 = vrot.slane %v197_v34, 7  ;;  %v215_v37 = vrot.slane %v196_v35, 7  ;;  %v173_v38 = vpop.permute.xlu1 %172  ;;  %v171_v39 = vpop.permute.xlu0 %170 }
  0xaf   : > { %v190_v40 = vsel %vm182_vm0, 0.0, %v173_v38  ;;  %v189_v41 = vsel %vm182_vm0, 0.0, %v171_v39 }
  0xb0   : > { %v239_v42 = vsel %vm208_vm2, %v216_v36, 0.0  ;;  %v217_v43 = vsel %vm208_vm2, %v215_v37, %v216_v36  ;;  %v235_v44 = vsel %vm208_vm2, 0.0, %v215_v37  ;;  %v199_v45 = vsel %vm191_vm1, %v190_v40, 0.0 }
  0xb1   : > { %251 = vst.msk [vmem:[%s552_s10 + $0x40] sm:$0x3] %vm244_vm4, %v239_v42  ;;  %v219_v46 = vrot.slane %v199_v45, 7  ;;  %v198_v47 = vsel %vm191_vm1, %v189_v41, 0.0 }
  0xb2   : > { %249 = vst.msk [vmem:[%s552_s10 + $0x30] sm:$0xff] %vm241_vm3, %v235_v44  ;;  %250 = vst.msk [vmem:[%s552_s10 + $0x38] sm:$0xff] %vm241_vm3, %v217_v43  ;;  %v218_v48 = vrot.slane %v198_v47, 7 }
  0xb3   : > { %v240_v49 = vsel %vm208_vm2, %v219_v46, 0.0 }
  0xb4   : > { %254 = vst.msk [vmem:[%s552_s10 + $0x58] sm:$0x3] %vm244_vm4, %v240_v49  ;;  %v220_v50 = vsel %vm208_vm2, %v218_v48, %v219_v46  ;;  %v236_v51 = vsel %vm208_vm2, 0.0, %v218_v48 }
  0xb5   : > { %252 = vst.msk [vmem:[%s552_s10 + $0x48] sm:$0xff] %vm241_vm3, %v236_v51  ;;  %253 = vst.msk [vmem:[%s552_s10 + $0x50] sm:$0xff] %vm241_vm3, %v220_v50 }
  0xb6 PF: > { %p11_p9 = scmp.ge.s32.totalorder %s481_s11, 4   ;;  %s622_s6 = smov %s437_s7 }
  0xb7   : > { %s623_s7 = smov %s441_s8  ;;  %s624_s8 = smov %s491_s14 }
  0xb8   : > { %s625_s9 = smov %s481_s11  ;;  %13 = sbr.rel (!%p11_p9) target bundleno = 3 (0x3), region = 64 }
  0xbd   :  { %279 = vsyncpa [#allocation3], 1 }
  0xbe   :  { %281 = vsyncpa [#allocation3 + $0x1], 1 }

</bundles_post_ra>
